<compile_context>
chip_gen: v6e
topology: v6e:2x2x1
jax: 0.10.0
libtpu: 0.0.40
codegen_flags: <defaults>
</compile_context>

<pallas_src>
import math

import jax
import jax.numpy as jnp
from jax.experimental import pallas as pl
from jax.experimental.pallas import tpu as pltpu

# ---- module constants (would come from __init__ args) -----------------------
B = 2            # batch of latents (the module's global B)
Z = 512          # latent dim
C, H, W = 3, 16, 16
CHW = C * H * W  # 768 = 6 * 128 (lane-dense output)
N_LAYERS = 8     # StyleGAN2 mapper depth

MOTION_REACT = 0.5
MOTION_RANDOMNESS = 0.5   # unused in forward (kept for parity with __init__)
MOTION_SMOOTH = 0.75
TRUNCATION = 1.0

_LRELU_GAIN = 1.4142135623730951  # sqrt(2), StyleGAN2-style gain


# =============================================================================
# Kernel 1: motion-sign scan + latent smoothing (the only sequential part).
#   grid = (n_blocks,), "arbitrary"; sign state carried in VMEM scratch.
#   Per block: fori_loop over F frames of tiny (B, Z) VPU work.
# =============================================================================
def _make_signscan_kernel(frames_per_block, n_valid_frames):
    def kernel(lat_ref, rand_ref, signs_in_ref,
               smooth_ref, signs_out_ref, signs_sc):
        blk = pl.program_id(0)

        # Seed the carried motion-sign state once per chunk.
        @pl.when(blk == 0)
        def _():
            signs_sc[...] = signs_in_ref[...]

        base = blk * frames_per_block

        def body(f, signs):
            lat = lat_ref[f]                                        # (B, Z) f32
            # torch: motion_signs[latent - motion_react < -2*truncation] = 1
            new_signs = jnp.where(lat - MOTION_REACT < -2.0 * TRUNCATION,
                                  1.0, signs)
            # torch: motion_signs[latent + motion_react >= 2*truncation] = -1
            new_signs = jnp.where(lat + MOTION_REACT >= 2.0 * TRUNCATION,
                                  -1.0, new_signs)
            # padded frames (beyond the valid chunk) must not disturb the state
            is_valid = base + f < n_valid_frames
            new_signs = jnp.where(is_valid, new_signs, signs)

            noise = MOTION_REACT * new_signs * rand_ref[f]
            smooth_ref[f] = (lat * MOTION_SMOOTH
                             + (lat + noise) * (1.0 - MOTION_SMOOTH))
            return new_signs

        signs = jax.lax.fori_loop(0, frames_per_block, body, signs_sc[...])
        signs_sc[...] = signs
        signs_out_ref[...] = signs

    return kernel


def _signscan_call(lat_pad, rand_pad, motion_signs, frames_per_block, n_valid):
    n_pad = lat_pad.shape[0]
    n_blocks = n_pad // frames_per_block
    kernel = _make_signscan_kernel(frames_per_block, n_valid)
    grid_spec = pltpu.PrefetchScalarGridSpec(
        num_scalar_prefetch=0,
        grid=(n_blocks,),
        in_specs=[
            pl.BlockSpec((frames_per_block, B, Z), lambda i: (i, 0, 0)),  # latents
            pl.BlockSpec((frames_per_block, B, Z), lambda i: (i, 0, 0)),  # rand
            pl.BlockSpec((B, Z), lambda i: (0, 0)),                       # init signs
        ],
        out_specs=[
            pl.BlockSpec((frames_per_block, B, Z), lambda i: (i, 0, 0)),  # smoothed
            pl.BlockSpec((B, Z), lambda i: (0, 0)),                       # final signs
        ],
        scratch_shapes=[pltpu.VMEM((B, Z), jnp.float32)],                 # carried state
    )
    smoothed, signs_out = pl.pallas_call(
        kernel,
        out_shape=(
            jax.ShapeDtypeStruct((n_pad, B, Z), jnp.float32),
            jax.ShapeDtypeStruct((B, Z), jnp.float32),
        ),
        grid_spec=grid_spec,
        compiler_params=pltpu.CompilerParams(
            dimension_semantics=("arbitrary",),   # true recurrence on signs
            vmem_limit_bytes=32 * 1024 * 1024,
        ),
    )(lat_pad, rand_pad, motion_signs)
    return smoothed, signs_out


# =============================================================================
# Kernel 2: mapper + synthesizer, F frames batched into an (M, Z) slab per
#   grid step (M = F*B = 256).  Frame blocks are independent -> "parallel".
# =============================================================================
def _mapsynth_kernel(x_ref, map_w_ref, map_b_ref, synth_w_ref, synth_b_ref,
                     img_ref):
    x = x_ref[...]                                          # (M, Z) f32

    # --- synthetic StyleGAN2 mapper: pixel-norm + 8x (FC + bias + lrelu) ---
    x = x * jax.lax.rsqrt(jnp.mean(x * x, axis=-1, keepdims=True) + 1e-8)
    for l in range(N_LAYERS):               # static unroll; weights stay in VMEM
        y = jnp.dot(x.astype(jnp.bfloat16), map_w_ref[l],
                    preferred_element_type=jnp.float32) + map_b_ref[l]
        # leaky-relu(0.2) with sqrt(2) gain; f32 VPU math (v5e-safe)
        x = jnp.where(y > 0.0, y, 0.2 * y) * _LRELU_GAIN

    # --- synthetic synthesizer: dense 512 -> C*H*W, tanh, .add(1).div(2) ---
    raw = jnp.dot(x.astype(jnp.bfloat16), synth_w_ref[...],
                  preferred_element_type=jnp.float32)
    raw = jnp.tanh(raw + synth_b_ref[...])
    # tanh is already in [-1, 1] -> (raw + 1) / 2 is in [0, 1]; no clamp needed
    img_ref[...] = (raw + 1.0) * 0.5


def _mapsynth_call(x_blocks, params):
    n_blocks, m_rows, _ = x_blocks.shape
    grid_spec = pltpu.PrefetchScalarGridSpec(
        num_scalar_prefetch=0,
        grid=(n_blocks,),
        in_specs=[
            pl.BlockSpec((None, m_rows, Z), lambda i: (i, 0, 0)),   # activation slab
            pl.BlockSpec((N_LAYERS, Z, Z), lambda i: (0, 0, 0)),    # mapper W (resident)
            pl.BlockSpec((N_LAYERS, 1, Z), lambda i: (0, 0, 0)),    # mapper b (resident)
            pl.BlockSpec((Z, CHW), lambda i: (0, 0)),               # synth W (resident)
            pl.BlockSpec((1, CHW), lambda i: (0, 0)),               # synth b (resident)
        ],
        out_specs=pl.BlockSpec((None, m_rows, CHW), lambda i: (i, 0, 0)),
    )
    img = pl.pallas_call(
        _mapsynth_kernel,
        out_shape=jax.ShapeDtypeStruct((n_blocks, m_rows, CHW), jnp.float32),
        grid_spec=grid_spec,
        compiler_params=pltpu.CompilerParams(
            dimension_semantics=("parallel",),    # blocks independent -> 2 TCs on v7x
            vmem_limit_bytes=48 * 1024 * 1024,    # bf16 weights + 256-row act/img tiles
        ),
    )(x_blocks, params["map_w"], params["map_b"],
      params["synth_w"], params["synth_b"])
    return img


# =============================================================================
# Functional RealtimeModule forward (state handled explicitly in the wrapper)
# =============================================================================
def _fresh_rand_factors(key, frame_idx):
    # torch: ones; subtract 0.5 where rand > 0.5  -> values in {1.0, 0.5}
    k = jax.random.fold_in(key, frame_idx)
    return jnp.where(jax.random.uniform(k, (B, Z)) > 0.5, 0.5, 1.0).astype(jnp.float32)


def _build_rand_per_frame(rand_factors, frame_i, n_frames, key):
    """Per-frame rand_factors honoring the every-(24*4)-calls refresh schedule.

    Built as a single gather over the (few) refreshed factor tensors instead of
    a per-frame jnp.stack, so long chunks don't bloat the XLA graph.
    """
    period = 24 * 4
    factors = [rand_factors]
    seg_ids = []
    cur = 0
    for f in range(n_frames):
        if (frame_i + f) % period == 0:
            factors.append(_fresh_rand_factors(key, frame_i + f))
            cur = len(factors) - 1
        seg_ids.append(cur)
    stacked = jnp.stack(factors, axis=0)                        # (n_segs, B, Z)
    idx = jnp.asarray(seg_ids, dtype=jnp.int32)                 # (n_frames,)
    return jnp.take(stacked, idx, axis=0), factors[cur]


def _choose_frames_per_block(n_frames):
    target_rows = 256                        # multiple of 128 (v5e) and 256 (v6e/v7x) MXU rows
    full = max(1, target_rows // B)          # 128 frames -> M = 256
    if n_frames >= full:
        return full
    step = max(1, 8 // math.gcd(8, B))       # keep M = F*B a multiple of 8 (full sublanes)
    return ((n_frames + step - 1) // step) * step


def realtime_forward_chunk(latents, motion_signs, rand_factors, frame_i, params, key):
    """Run n_frames consecutive forward() calls.

    Kernel 1 (sequential, tiny) updates motion signs and smooths latents;
    kernel 2 batches F frames per grid step through the mapper/synthesizer.
    `frame_i` must be a concrete Python int (drives the stateful rand refresh).
    """
    n_frames = latents.shape[0]
    rand_per_frame, rand_factors_out = _build_rand_per_frame(
        rand_factors, frame_i, n_frames, key)

    frames_per_block = _choose_frames_per_block(n_frames)
    n_blocks = -(-n_frames // frames_per_block)
    n_pad = n_blocks * frames_per_block
    pad = n_pad - n_frames
    lat_pad = jnp.pad(latents, ((0, pad), (0, 0), (0, 0)))
    rand_pad = jnp.pad(rand_per_frame, ((0, pad), (0, 0), (0, 0)))

    # 1) sequential sign/smooth scan (padded frames gated off the sign state)
    smoothed_pad, new_signs = _signscan_call(
        lat_pad, rand_pad, motion_signs, frames_per_block, n_frames)

    # 2) batched mapper + synthesizer on (M, Z) = (F*B, Z) slabs
    m_rows = frames_per_block * B
    img_blocks = _mapsynth_call(smoothed_pad.reshape(n_blocks, m_rows, Z), params)

    imgs = img_blocks.reshape(n_pad, B, C, H, W)[:n_frames]
    new_lat = smoothed_pad[:n_frames]
    return (new_lat, imgs), (new_signs, rand_factors_out, frame_i + n_frames)


def realtime_forward(latent, motion_signs, rand_factors, frame_i, params, key):
    """Single-frame forward matching RealtimeModule.forward() semantics.

    Routed through the chunked path (padded to one small block); for true
    realtime use, submit multi-frame chunks so the weight DMA and grid-step
    overhead are amortized.
    """
    (new_lat, imgs), state = realtime_forward_chunk(
        latent[None], motion_signs, rand_factors, frame_i, params, key)
    return (new_lat[0], imgs[0]), state


# =============================================================================
# Deterministic parameter / state init and smoke test
# =============================================================================
def init_params_and_state(key):
    k1, k2, k3, k4, k5 = jax.random.split(key, 5)
    params = {
        # bf16 weights: halves HBM->VMEM traffic; matmuls still accumulate in f32
        "map_w": (jax.random.normal(k1, (N_LAYERS, Z, Z), jnp.float32)
                  / jnp.sqrt(Z)).astype(jnp.bfloat16),
        "map_b": jnp.zeros((N_LAYERS, 1, Z), jnp.float32),
        "synth_w": (jax.random.normal(k2, (Z, CHW), jnp.float32)
                    / jnp.sqrt(Z)).astype(jnp.bfloat16),
        "synth_b": jnp.zeros((1, CHW), jnp.float32),
    }
    # rand_factors = ones, minus 0.5 where uniform > 0.5   -> values in {1.0, 0.5}
    rand_factors = jnp.where(
        jax.random.uniform(k3, (B, Z)) > 0.5, 0.5, 1.0).astype(jnp.float32)
    motion_signs = jnp.sign(jax.random.normal(k4, (B, Z), jnp.float32))
    latent = jax.random.normal(k5, (B, Z), jnp.float32)
    return params, latent, motion_signs, rand_factors


if __name__ == "__main__":
    key = jax.random.PRNGKey(0)
    params, latent, motion_signs, rand_factors = init_params_and_state(key)
    frame_i = 0

    # ---- single-frame forward (per-call semantics of the module) ------------
    (new_latent, img), (motion_signs, rand_factors, frame_i) = realtime_forward(
        latent, motion_signs, rand_factors, frame_i, params, key)
    jax.block_until_ready((new_latent, img))
    assert new_latent.shape == (B, Z)
    assert img.shape == (B, C, H, W)
    assert bool(jnp.all(img >= 0.0)) and bool(jnp.all(img <= 1.0))
    assert bool(jnp.all(jnp.isfinite(new_latent)))

    # ---- multi-frame chunk: 128 frames -> one (256, 512) MXU slab per step --
    n_frames = 128
    lat_seq = jnp.broadcast_to(new_latent, (n_frames, B, Z))
    (lat_out, imgs), (motion_signs, rand_factors, frame_i) = realtime_forward_chunk(
        lat_seq, motion_signs, rand_factors, frame_i, params, key)
    jax.block_until_ready((lat_out, imgs))
    assert lat_out.shape == (n_frames, B, Z)
    assert imgs.shape == (n_frames, B, C, H, W)
    assert bool(jnp.all(imgs >= 0.0)) and bool(jnp.all(imgs <= 1.0))
    assert bool(jnp.all(jnp.isfinite(lat_out)))

    print("KERNEL_OK")
</pallas_src>

<mosaic_0001>
module attributes {stable_mosaic.version = 11 : i64} {
  func.func @kernel(%arg0: i32, %arg1: memref<4x2x512xf32, #tpu.memory_space<vmem>>, %arg2: memref<4x2x512xf32, #tpu.memory_space<vmem>>, %arg3: memref<2x512xf32, #tpu.memory_space<vmem>>, %arg4: memref<4x2x512xf32, #tpu.memory_space<vmem>>, %arg5: memref<2x512xf32, #tpu.memory_space<vmem>>, %arg6: memref<2x512xf32, #tpu.memory_space<vmem>>) attributes {dimension_semantics = [#tpu.dimension_semantics<arbitrary>], iteration_bounds = array<i64: 1>, scalar_prefetch = 0 : i64, scratch_operands = 1 : i64, tpu.core_type = #tpu.core_type<tc>, window_params = [{transform_indices = @transform_0, window_bounds = array<i64: 4, 2, 512>}, {transform_indices = @transform_1, window_bounds = array<i64: 4, 2, 512>}, {pipeline_mode = #tpu.pipeline_mode<synchronous>, transform_indices = @transform_2, window_bounds = array<i64: 2, 512>}, {transform_indices = @transform_3, window_bounds = array<i64: 4, 2, 512>}, {pipeline_mode = #tpu.pipeline_mode<synchronous>, transform_indices = @transform_4, window_bounds = array<i64: 2, 512>}]} {
    %c0_i32 = arith.constant 0 : i32
    %0 = arith.cmpi eq, %arg0, %c0_i32 : i32
    %1 = arith.extui %0 : i1 to i32
    %c0_i32_0 = arith.constant 0 : i32
    %2 = arith.cmpi ne, %1, %c0_i32_0 : i32
    scf.if %2 {
      %c0_9 = arith.constant 0 : index
      %c0_10 = arith.constant 0 : index
      %9 = vector.load %arg3[%c0_9, %c0_10] : memref<2x512xf32, #tpu.memory_space<vmem>>, vector<2x512xf32>
      %c0_11 = arith.constant 0 : index
      %c0_12 = arith.constant 0 : index
      %10 = vector.load %arg6[%c0_11, %c0_12] : memref<2x512xf32, #tpu.memory_space<vmem>>, vector<2x512xf32>
      tpu.vector_store %arg6[%c0_11, %c0_12], %9 {strides = array<i32>} : memref<2x512xf32, #tpu.memory_space<vmem>>, vector<2x512xf32>,
    } else {
    }
    %c4_i32 = arith.constant 4 : i32
    %3 = arith.muli %arg0, %c4_i32 : i32
    %c0 = arith.constant 0 : index
    %c0_1 = arith.constant 0 : index
    %4 = vector.load %arg6[%c0, %c0_1] : memref<2x512xf32, #tpu.memory_space<vmem>>, vector<2x512xf32>
    %c0_i32_2 = arith.constant 0 : i32
    %c4_i32_3 = arith.constant 4 : i32
    %5 = arith.addi %c0_i32_2, %c4_i32_3 : i32
    %c1_i32 = arith.constant 1 : i32
    %6 = scf.for %arg7 = %c0_i32_2 to %5 step %c1_i32 iter_args(%arg8 = %4) -> (vector<2x512xf32>)  : i32 {
      %9 = arith.index_cast %arg7 : i32 to index
      %c0_9 = arith.constant 0 : index
      %c0_10 = arith.constant 0 : index
      %10 = vector.load %arg1[%9, %c0_9, %c0_10] : memref<4x2x512xf32, #tpu.memory_space<vmem>>, vector<1x2x512xf32>
      %11 = vector.shape_cast %10 : vector<1x2x512xf32> to vector<2x512xf32>
      %cst = arith.constant 5.000000e-01 : f32
      %12 = vector.broadcast %cst : f32 to vector<2x512xf32>
      %13 = arith.subf %11, %12 : vector<2x512xf32>
      %cst_11 = arith.constant -2.000000e+00 : f32
      %14 = vector.broadcast %cst_11 : f32 to vector<2x512xf32>
      %15 = arith.cmpf olt, %13, %14 : vector<2x512xf32>
      %cst_12 = arith.constant 1.000000e+00 : f32
      %16 = vector.broadcast %cst_12 : f32 to vector<2x512xf32>
      %17 = arith.select %15, %16, %arg8 : vector<2x512xi1>, vector<2x512xf32>
      %cst_13 = arith.constant 5.000000e-01 : f32
      %18 = vector.broadcast %cst_13 : f32 to vector<2x512xf32>
      %19 = arith.addf %11, %18 : vector<2x512xf32>
      %cst_14 = arith.constant 2.000000e+00 : f32
      %20 = vector.broadcast %cst_14 : f32 to vector<2x512xf32>
      %21 = arith.cmpf oge, %19, %20 : vector<2x512xf32>
      %cst_15 = arith.constant -1.000000e+00 : f32
      %22 = vector.broadcast %cst_15 : f32 to vector<2x512xf32>
      %23 = arith.select %21, %22, %17 : vector<2x512xi1>, vector<2x512xf32>
      %24 = arith.addi %3, %arg7 : i32
      %c1_i32_16 = arith.constant 1 : i32
      %25 = arith.cmpi slt, %24, %c1_i32_16 : i32
      %26 = arith.select %25, %23, %arg8 : vector<2x512xf32>
      %cst_17 = arith.constant 5.000000e-01 : f32
      %27 = vector.broadcast %cst_17 : f32 to vector<2x512xf32>
      %28 = arith.mulf %27, %26 : vector<2x512xf32>
      %29 = arith.index_cast %arg7 : i32 to index
      %c0_18 = arith.constant 0 : index
      %c0_19 = arith.constant 0 : index
      %30 = vector.load %arg2[%29, %c0_18, %c0_19] : memref<4x2x512xf32, #tpu.memory_space<vmem>>, vector<1x2x512xf32>
      %31 = vector.shape_cast %30 : vector<1x2x512xf32> to vector<2x512xf32>
      %32 = arith.mulf %28, %31 : vector<2x512xf32>
      %cst_20 = arith.constant 7.500000e-01 : f32
      %33 = vector.broadcast %cst_20 : f32 to vector<2x512xf32>
      %34 = arith.mulf %11, %33 : vector<2x512xf32>
      %35 = arith.addf %11, %32 : vector<2x512xf32>
      %cst_21 = arith.constant 2.500000e-01 : f32
      %36 = vector.broadcast %cst_21 : f32 to vector<2x512xf32>
      %37 = arith.mulf %35, %36 : vector<2x512xf32>
      %38 = arith.addf %34, %37 : vector<2x512xf32>
      %39 = arith.index_cast %arg7 : i32 to index
      %c0_22 = arith.constant 0 : index
      %c0_23 = arith.constant 0 : index
      %40 = vector.load %arg4[%39, %c0_22, %c0_23] : memref<4x2x512xf32, #tpu.memory_space<vmem>>, vector<1x2x512xf32>
      %41 = vector.shape_cast %40 : vector<1x2x512xf32> to vector<2x512xf32>
      %42 = vector.shape_cast %38 : vector<2x512xf32> to vector<1x2x512xf32>
      tpu.vector_store %arg4[%39, %c0_22, %c0_23], %42 {strides = array<i32>} : memref<4x2x512xf32, #tpu.memory_space<vmem>>, vector<1x2x512xf32>,
      scf.yield %26 : vector<2x512xf32>
    }
    %c4_i32_4 = arith.constant 4 : i32
    %c0_5 = arith.constant 0 : index
    %c0_6 = arith.constant 0 : index
    %7 = vector.load %arg6[%c0_5, %c0_6] : memref<2x512xf32, #tpu.memory_space<vmem>>, vector<2x512xf32>
    tpu.vector_store %arg6[%c0_5, %c0_6], %6 {strides = array<i32>} : memref<2x512xf32, #tpu.memory_space<vmem>>, vector<2x512xf32>,
    %c0_7 = arith.constant 0 : index
    %c0_8 = arith.constant 0 : index
    %8 = vector.load %arg5[%c0_7, %c0_8] : memref<2x512xf32, #tpu.memory_space<vmem>>, vector<2x512xf32>
    tpu.vector_store %arg5[%c0_7, %c0_8], %6 {strides = array<i32>} : memref<2x512xf32, #tpu.memory_space<vmem>>, vector<2x512xf32>,
    return
  }
  func.func @transform_0(%arg0: i32) -> (i32, i32, i32) {
    %c0_i32 = arith.constant 0 : i32
    %c0_i32_0 = arith.constant 0 : i32
    %c0_i32_1 = arith.constant 0 : i32
    return %arg0, %c0_i32, %c0_i32_0 : i32, i32, i32
  }
  func.func @transform_1(%arg0: i32) -> (i32, i32, i32) {
    %c0_i32 = arith.constant 0 : i32
    %c0_i32_0 = arith.constant 0 : i32
    %c0_i32_1 = arith.constant 0 : i32
    return %arg0, %c0_i32, %c0_i32_0 : i32, i32, i32
  }
  func.func @transform_2(%arg0: i32) -> (i32, i32) {
    %c0_i32 = arith.constant 0 : i32
    %c0_i32_0 = arith.constant 0 : i32
    %c0_i32_1 = arith.constant 0 : i32
    return %c0_i32, %c0_i32_0 : i32, i32
  }
  func.func @transform_3(%arg0: i32) -> (i32, i32, i32) {
    %c0_i32 = arith.constant 0 : i32
    %c0_i32_0 = arith.constant 0 : i32
    %c0_i32_1 = arith.constant 0 : i32
    return %arg0, %c0_i32, %c0_i32_0 : i32, i32, i32
  }
  func.func @transform_4(%arg0: i32) -> (i32, i32) {
    %c0_i32 = arith.constant 0 : i32
    %c0_i32_0 = arith.constant 0 : i32
    %c0_i32_1 = arith.constant 0 : i32
    return %c0_i32, %c0_i32_0 : i32, i32
  }
}

</mosaic_0001>

<bundles_post_ra>
// kernel: tpu_custom_call.1
= control target key start
LH: loop header
LB: loop body
LE: loop exit
PB: predicated region body
PF: predicated region fallthrough
CT: control target
= control target key end

     0   :  { %10 = vsyncpa [#allocation4], 0  ;;  %s364_s0 = inlined_call_operand.hbm [shape: f32[4,2,512], index: 0, kind: input, shape index: {}]   ;;  %s365_s1 = inlined_call_operand.hbm [shape: f32[4,2,512], index: 1, kind: input, shape index: {}]   ;;  %s366_s2 = inlined_call_operand.hbm [shape: f32[2,512], index: 2, kind: input, shape index: {}]   ;;  %s367_s3 = inlined_call_operand.hbm [shape: f32[4,2,512], index: 3, kind: output, shape index: {0}]   ;;  %s368_s4 = inlined_call_operand.hbm [shape: f32[2,512], index: 4, kind: output, shape index: {1}]  }
   0x1   :  { %11 = vsyncpa [#allocation7], 0 }
   0x2   :  { %12 = vsyncpa [#allocation5], 0 }
   0x3   :  { %13 = vsyncpa [#allocation11], 0  ;;  %s303_s15 = smov [#allocation6]   ;;  %s304_s17 = smov [#allocation3]  }
   0x4   :  { %s31_s16 = sshll.u32 %s303_s15, 4  ;;  %s19_s18 = sshll.u32 %s304_s17, 4  ;;  %s32_s16 = int_to_ptr.vmem [resolvable:$true] %s31_s16  ;;  %s20_s18 = int_to_ptr.vmem [resolvable:$true] %s19_s18 }
   0x5   :  { %s187_s19 = scalar_lea.vmem %s32_s16, 512  ;;  %p192_p1 = scmp.lt.s32.totalorder %s32_s16, %s32_s16 }
   0x6   :  { %p188_p0 = scmp.ne.s32.totalorder %s32_s16, %s187_s19  ;;  %p193_p2 = scmp.lt.s32.totalorder %s187_s19, %s187_s19 }
   0x8   :  { %p194_p3 = por %p193_p2, %p192_p1 }
   0xa   :  { %p195_p4 = pnand %p194_p3, %p188_p0 }
   0xc   :  { %198 = shalt.err (!%p195_p4)
}
   0xd   :  { %s305_s20 = smov 128   ;;  %s306_s21 = smov 8  }
   0xe   :  { %37 = dma.hbm_to_vmem [thread:$0]  %s365_s1, 512, %s32_s16, [#allocation7], %s305_s20, %s305_s20, %s306_s21  }
   0xf   :  { %s207_s24 = scalar_lea.vmem %s20_s18, 512  ;;  %p212_p6 = scmp.lt.s32.totalorder %s20_s18, %s20_s18 }
  0x10   :  { %p208_p5 = scmp.ne.s32.totalorder %s20_s18, %s207_s24  ;;  %p213_p7 = scmp.lt.s32.totalorder %s207_s24, %s207_s24 }
  0x12   :  { %p214_p8 = por %p213_p7, %p212_p6 }
  0x14   :  { %p215_p9 = pnand %p214_p8, %p208_p5 }
  0x16   :  { %218 = shalt.err (!%p215_p9)
}
  0x17   :  { %25 = dma.hbm_to_vmem [thread:$0]  %s364_s0, 512, %s20_s18, [#allocation4], %s305_s20, %s305_s20, %s306_s21  }
  0x18   :  { %s307_s27 = smov [#allocation8]  }
  0x19   :  { %s44_s28 = sshll.u32 %s307_s27, 4  ;;  %s45_s28 = int_to_ptr.vmem [resolvable:$true] %s44_s28 }
  0x1a   :  { %s227_s29 = scalar_lea.vmem %s45_s28, 128  ;;  %p232_p11 = scmp.lt.s32.totalorder %s45_s28, %s45_s28 }
  0x1b   :  { %p228_p10 = scmp.ne.s32.totalorder %s45_s28, %s227_s29  ;;  %p233_p12 = scmp.lt.s32.totalorder %s227_s29, %s227_s29 }
  0x1d   :  { %p234_p13 = por %p233_p12, %p232_p11 }
  0x1f   :  { %p235_p0 = pnand %p234_p13, %p228_p10 }
  0x21   :  { %238 = shalt.err (!%p235_p0)
}
  0x22   :  { %47 = dma.hbm_to_vmem [thread:$0]  %s366_s2, 128, %s45_s28, [#allocation7]  }
  0x23   :  { %287 = dma.done.wait [#allocation4], 512  }
  0x24   :  { %288 = vsyncadd [#allocation4], 4294966784 }
  0x25   :  { %289 = dma.done.wait [#allocation7], 640  }
  0x26   :  { %290 = vsyncadd [#allocation7], 4294966656  ;;  %v61_v0 = vld [vmem:[#allocation8] sm:$0xff]   ;;  %s350_s0 = smov 0  }
  0x27   :  { %v295_v1 = vmov %v61_v0  }
  0x28 LB: > { %s153_s5 = sshll.u32 %s301_s0, 3  ;;  %p83_p1 = scmp.lt.s32.totalorder %s301_s0, 1  ;;  %s301_s0 = sphi %s350_s0, %s70_s0   ;;  %v297_v1 = vphi %v295_v1, %v296_v1  }
  0x29   : > { %s74_s6 = scalar_lea.vmem [#allocation3], %s153_s5  ;;  %s90_s2 = scalar_lea.vmem [#allocation6], %s153_s5 }
  0x2a   : > { %v75_v2 = vld [vmem:[%s74_s6] sm:$0xff]  ;;  %s84_s7 = scalar_select %p83_p1, 1, 0 }
  0x2b   : > { %v150_v3 = vadd.f32 -0.5, %v75_v2  ;;  %v79_v4 = vadd.f32 0.5, %v75_v2  ;;  %v91_v9 = vld [vmem:[%s90_s2] sm:$0xff]  ;;  %v93_v12 = vmul.f32 0.75, %v75_v2  ;;  %s98_s8 = scalar_lea.vmem [#allocation9], %s153_s5  ;;  %s70_s0 = sadd.s32 1, %s301_s0  }
  0x2c   : > { %v85_v5 = vstv %s84_s7  ;;  %p67_p2 = scmp.ge.s32.totalorder %s70_s0, 4  }
  0x2d   : > { %vm77_vm0 = vcmp.lt.f32.partialorder %v150_v3, -2.0  ;;  %vm80_vm1 = vcmp.ge.f32.partialorder %v79_v4, 2.0  ;;  %vm86_vm2 = vcmp.eq.s32.totalorder %v85_v5, 1  ;;  %s308_s9 = smov (%p67_p2), [#allocation9]   ;;  %s309_s11 = smov (%p67_p2), [#allocation10]  }
  0x2e   : > { %v78_v6 = vsel %vm77_vm0, 1.0, %v297_v1  ;;  %s107_s10 = sshll.u32 (%p67_p2), %s308_s9, 4  ;;  %s120_s12 = sshll.u32 (%p67_p2), %s309_s11, 4  ;;  %s108_s10 = int_to_ptr.vmem [resolvable:$true] %s107_s10  ;;  %s121_s12 = int_to_ptr.vmem [resolvable:$true] %s120_s12 }
  0x2f   : > { %v81_v7 = vsel %vm80_vm1, -1.0, %v78_v6  ;;  %s239_s13 = scalar_lea.vmem (%p67_p2), %s108_s10, 512  ;;  %p244_p4 = scmp.lt.s32.totalorder (%p67_p2), %s108_s10, %s108_s10 }
  0x30   : > { %v87_v8 = vsel %vm86_vm2, %v81_v7, %v297_v1   ;;  %p240_p3 = scmp.ne.s32.totalorder (%p67_p2), %s108_s10, %s239_s13  ;;  %p245_p5 = scmp.lt.s32.totalorder (%p67_p2), %s239_s13, %s239_s13 }
  0x31   : > { %v88_v10 = vmul.f32 0.5, %v87_v8  ;;  %v296_v1 = vmov %v87_v8   ;;  %101 = vst [vmem:[#allocation10] sm:$0xff] (%p67_p2), %v87_v8 }
  0x32   :  { %p246_p6 = por (%p67_p2), %p245_p5, %p244_p4 }
  0x33   : > { %v92_v11 = vmul.f32 %v91_v9, %v88_v10 }
  0x34   :  { %p247_p7 = pnand (%p67_p2), %p246_p6, %p240_p3 }
  0x35   : > { %v94_v13 = vadd.f32 %v92_v11, %v75_v2 }
  0x37   : > { %v95_v14 = vmul.f32 0.25, %v94_v13  ;;  %69 = sbr.rel (!%p67_p2) target bundleno = 40 (0x28), region = 66 }
  0x39   : > { %v96_v15 = vadd.f32 %v95_v14, %v93_v12 }
  0x3b   : > { %99 = vst [vmem:[%s98_s8] sm:$0xff] %v96_v15 }
  0x3c   :  { %250 = shalt.err (!%p247_p7)
}
  0x3d   :  { %113 = dma.vmem_to_hbm [thread:$0]  %s108_s10, 512, %s367_s3, [#allocation5], %s305_s20, %s305_s20, %s306_s21  }
  0x3e   :  { %s259_s16 = scalar_lea.vmem %s121_s12, 128  ;;  %p264_p9 = scmp.lt.s32.totalorder %s121_s12, %s121_s12 }
  0x3f   :  { %p260_p8 = scmp.ne.s32.totalorder %s121_s12, %s259_s16  ;;  %p265_p10 = scmp.lt.s32.totalorder %s259_s16, %s259_s16 }
  0x41   :  { %p266_p11 = por %p265_p10, %p264_p9 }
  0x43   :  { %p267_p12 = pnand %p266_p11, %p260_p8 }
  0x45   :  { %270 = shalt.err (!%p267_p12)
}
  0x46   :  { %123 = dma.vmem_to_hbm [thread:$0]  %s121_s12, 128, %s368_s4, [#allocation11]  }
  0x47   :  { %291 = dma.done.wait [#allocation5], 512  }
  0x48   :  { %292 = vsyncadd [#allocation5], 4294966784 }
  0x49   :  { %293 = dma.done.wait [#allocation11], 128  }
  0x4a   :  { %294 = vsyncadd [#allocation11], 4294967168 }
  0x4b   :  { %130 = vsyncpa [#allocation4], 1 }
  0x4c   :  { %131 = vsyncpa [#allocation7], 1 }
  0x4d   :  { %132 = vsyncpa [#allocation5], 1 }
  0x4e   :  { %133 = vsyncpa [#allocation11], 1 }

</bundles_post_ra>
